<compile_context>
chip_gen: v6e
topology: v6e:2x2x1
jax: 0.10.0
libtpu: 0.0.40
codegen_flags: <defaults>
</compile_context>

<pallas_src>
import jax
import jax.numpy as jnp
from jax.experimental import pallas as pl
from jax.experimental.pallas import tpu as pltpu


# ---------------------------------------------------------------------------
# Kernel: single fused affine map  y = x @ W + b
# ---------------------------------------------------------------------------
def _fused_affine_kernel(x_ref, w_ref, b_ref, o_ref):
    y = jnp.dot(x_ref[...], w_ref[...], preferred_element_type=jnp.float32)
    o_ref[...] = (y + b_ref[...]).astype(o_ref.dtype)


def _round_up(n, m):
    return ((n + m - 1) // m) * m


def _vmem_budget_bytes():
    # Generation-aware VMEM budget with headroom for double buffering and
    # compiler-internal scratch: ~72% of physical VMEM
    # (~92 MiB on v5e/v6e's 128 MiB, ~46 MiB on v7x's 64 MiB).
    cap = 64 * 1024 * 1024  # conservative (v7x) fallback
    try:
        info = pltpu.get_tpu_info()
        cap = int(getattr(info, "vmem_capacity_bytes", cap)) or cap
    except Exception:
        pass
    return int(cap * 0.72)


# ---------------------------------------------------------------------------
# One-time parameter preparation (hoisted OUT of the per-forward hot path).
# ---------------------------------------------------------------------------
def prepare_output_net_params(w1, b1, w2, b2, *, compute_dtype=jnp.bfloat16):
    """Fold the two Linear layers into a single affine map, once.

    w1: (input_size, 2*hidden)   pre-transposed nn.Linear weight
    b1: (2*hidden,)
    w2: (2*hidden, out_class)    pre-transposed nn.Linear weight
    b2: (out_class,)
    Returns:
      w_fused: (input_size, out_class) in `compute_dtype`
      b_fused: (1, out_class) in float32
    """
    w_fused = jnp.dot(w1, w2, preferred_element_type=jnp.float32)
    b_fused = jnp.dot(b1[None, :], w2, preferred_element_type=jnp.float32) + b2[None, :]
    return w_fused.astype(compute_dtype), b_fused.astype(jnp.float32)


# ---------------------------------------------------------------------------
# Forward: hot path is just one pallas_call (plus at most one x dtype cast).
# ---------------------------------------------------------------------------
def output_net_forward(x, w_fused, b_fused, *, out_dtype=None):
    """x: (B, input_size); w_fused/b_fused from prepare_output_net_params."""
    B, in_dim = x.shape
    out_dim = w_fused.shape[1]
    out_dtype = out_dtype if out_dtype is not None else x.dtype

    compute_dtype = w_fused.dtype
    x_c = x if x.dtype == compute_dtype else x.astype(compute_dtype)

    x_itemsize = jnp.dtype(compute_dtype).itemsize
    out_itemsize = jnp.dtype(out_dtype).itemsize
    w_bytes = in_dim * out_dim * x_itemsize
    b_bytes = out_dim * 4
    budget = _vmem_budget_bytes()
    sub = 16 if x_itemsize < 4 else 8  # sublane packing of the batch axis

    cost = pl.CostEstimate(
        flops=2 * B * in_dim * out_dim,
        transcendentals=0,
        bytes_accessed=B * in_dim * x_itemsize + w_bytes + b_bytes + B * out_dim * out_itemsize,
    )

    # --- small/medium batch: straight-line program, zero per-step bookkeeping.
    resident_bytes = (_round_up(B, sub) * (in_dim * x_itemsize + out_dim * 4)
                      + w_bytes + b_bytes)
    if resident_bytes <= budget // 2:
        return pl.pallas_call(
            _fused_affine_kernel,
            out_shape=jax.ShapeDtypeStruct((B, out_dim), out_dtype),
            in_specs=[
                pl.BlockSpec(memory_space=pltpu.MemorySpace.VMEM),
                pl.BlockSpec(memory_space=pltpu.MemorySpace.VMEM),
                pl.BlockSpec(memory_space=pltpu.MemorySpace.VMEM),
            ],
            out_specs=pl.BlockSpec(memory_space=pltpu.MemorySpace.VMEM),
            cost_estimate=cost,
            compiler_params=pltpu.CompilerParams(vmem_limit_bytes=budget),
        )(x_c, w_fused, b_fused)

    # --- large batch: tile the batch axis only; weights/bias stay resident.
    # Target >= ~2 MiB of x per grid step; cap by the double-buffered VMEM budget.
    per_row_in = in_dim * x_itemsize
    bt_target = max(512, _round_up(pl.cdiv(2 * 1024 * 1024, per_row_in), sub))
    bt_cap = (budget - w_bytes - b_bytes) // (2 * (per_row_in + out_dim * out_itemsize))
    bt_cap = max(sub, (bt_cap // sub) * sub)
    batch_tile = min(bt_target, bt_cap)

    # v7x megacore: ensure >= 2 (even) grid steps so both TensorCores get work.
    num_steps = max(2, pl.cdiv(B, batch_tile))
    if num_steps % 2:
        num_steps += 1
    batch_tile = min(batch_tile, _round_up(pl.cdiv(B, num_steps), sub))
    # TODO(synk): if in_dim ever grows so large that a single (sub, in_dim) x
    # block overflows the budget, add a K ("arbitrary", last) grid axis with a
    # f32 VMEM accumulator + pl.when init/finalize instead of relying on the
    # VMEM limit.

    grid = (pl.cdiv(B, batch_tile),)
    return pl.pallas_call(
        _fused_affine_kernel,
        out_shape=jax.ShapeDtypeStruct((B, out_dim), out_dtype),
        grid=grid,
        in_specs=[
            pl.BlockSpec((batch_tile, in_dim), lambda i: (i, 0)),
            pl.BlockSpec((in_dim, out_dim), lambda i: (0, 0)),
            pl.BlockSpec((1, out_dim), lambda i: (0, 0)),
        ],
        out_specs=pl.BlockSpec((batch_tile, out_dim), lambda i: (i, 0)),
        cost_estimate=cost,
        compiler_params=pltpu.CompilerParams(
            dimension_semantics=("parallel",),
            vmem_limit_bytes=budget,
        ),
    )(x_c, w_fused, b_fused)


if __name__ == "__main__":
    # Module hyperparameters (consistent with Output_net.__init__):
    #   input_size = 64, args.hidden_layer = 32 -> hidden_dim*2 = 64,
    #   args.out_class = 4, batch = 8.
    input_size = 64
    hidden_layer = 32
    out_class = 4
    batch = 8
    H2 = hidden_layer * 2

    key = jax.random.PRNGKey(0)
    kx, kw1, kb1, kw2, kb2 = jax.random.split(key, 5)

    x = jax.random.normal(kx, (batch, input_size), dtype=jnp.float32)
    # Parameters stored pre-transposed ((in, out)) so the kernel does x @ W.
    w1 = jax.random.normal(kw1, (input_size, H2), dtype=jnp.float32) * 0.1
    b1 = jax.random.normal(kb1, (H2,), dtype=jnp.float32) * 0.1
    w2 = jax.random.normal(kw2, (H2, out_class), dtype=jnp.float32) * 0.1
    b2 = jax.random.normal(kb2, (out_class,), dtype=jnp.float32) * 0.1

    # Unfused pure-JAX reference (exact PyTorch forward semantics).
    y_ref = (x @ w1 + b1) @ w2 + b2

    # --- f32 compute path: exact-parity check of the fold.
    w_f32, b_f32 = prepare_output_net_params(w1, b1, w2, b2, compute_dtype=jnp.float32)
    y_f32 = jax.block_until_ready(output_net_forward(x, w_f32, b_f32))
    assert y_f32.shape == (batch, out_class)
    assert jnp.allclose(y_f32, y_ref, atol=1e-4, rtol=1e-4)

    # --- default bf16 operand path (f32 accumulation): bandwidth-optimized.
    w_bf, b_bf = prepare_output_net_params(w1, b1, w2, b2)  # bf16 default
    y_bf = jax.block_until_ready(output_net_forward(x, w_bf, b_bf))
    assert y_bf.shape == (batch, out_class)
    assert jnp.allclose(y_bf, y_ref, atol=3e-2, rtol=3e-2)

    print("KERNEL_OK")
</pallas_src>

<mosaic_0001>
module attributes {stable_mosaic.version = 11 : i64} {
  func.func @_fused_affine_kernel(%arg0: memref<8x64xf32, #tpu.memory_space<vmem>>, %arg1: memref<64x4xf32, #tpu.memory_space<vmem>>, %arg2: memref<1x4xf32, #tpu.memory_space<vmem>>, %arg3: memref<8x4xf32, #tpu.memory_space<vmem>>) attributes {dimension_semantics = [], scalar_prefetch = 0 : i64, scratch_operands = 0 : i64, tpu.core_type = #tpu.core_type<tc>} {
    %c0 = arith.constant 0 : index
    %c0_0 = arith.constant 0 : index
    %0 = vector.load %arg0[%c0, %c0_0] : memref<8x64xf32, #tpu.memory_space<vmem>>, vector<8x64xf32>
    %c0_1 = arith.constant 0 : index
    %c0_2 = arith.constant 0 : index
    %1 = vector.load %arg1[%c0_1, %c0_2] : memref<64x4xf32, #tpu.memory_space<vmem>>, vector<64x4xf32>
    %cst = arith.constant dense<0.000000e+00> : vector<8x4xf32>
    %2 = tpu.matmul %0, %1, %cst {dimension_numbers = #tpu.dot_dimension_numbers<[1], [0], [0], [1], [0, 0, 1, 1], [], []>} : vector<8x64xf32>, vector<64x4xf32>, vector<8x4xf32> -> vector<8x4xf32>
    %c0_3 = arith.constant 0 : index
    %c0_4 = arith.constant 0 : index
    %3 = vector.load %arg2[%c0_3, %c0_4] : memref<1x4xf32, #tpu.memory_space<vmem>>, vector<1x4xf32>
    %4 = vector.broadcast %3 : vector<1x4xf32> to vector<8x4xf32>
    %5 = arith.addf %2, %4 : vector<8x4xf32>
    %c0_5 = arith.constant 0 : index
    %c0_6 = arith.constant 0 : index
    %6 = vector.load %arg3[%c0_5, %c0_6] : memref<8x4xf32, #tpu.memory_space<vmem>>, vector<8x4xf32>
    tpu.vector_store %arg3[%c0_5, %c0_6], %5 {strides = array<i32>} : memref<8x4xf32, #tpu.memory_space<vmem>>, vector<8x4xf32>,
    return
  }
}

</mosaic_0001>

<bundles_post_ra>
// kernel: tpu_custom_call.1
= control target key start
LH: loop header
LB: loop body
LE: loop exit
PB: predicated region body
PF: predicated region fallthrough
CT: control target
= control target key end

     0   :  { %v142_v0 = vmov 0.0   ;;  %vm143_vm0 = vmmov 0   ;;  %vm30_vm1 = vcmask 523264   ;;  %vm104_vm2 = vcmask 31744   ;;  %s197_s1 = inlined_call_operand.vmem [shape: f32[64,4], index: 1, kind: input, shape index: {}]   ;;  %s198_s0 = inlined_call_operand.vmem [shape: f32[8,64], index: 0, kind: input, shape index: {}]   ;;  %s199_s2 = inlined_call_operand.vmem [shape: f32[1,4], index: 2, kind: input, shape index: {}]   ;;  %s200_s3 = inlined_call_operand.vmem [shape: f32[8,4], index: 3, kind: output, shape index: {}]  }
   0x1   :  { %121 = vmatprep.subr.mxu0 %v142_v0  ;;  %v22_v1 = vld [vmem:[%s197_s1 + $0x38] sm:$0xff]  ;;  %v21_v2 = vld [vmem:[%s197_s1 + $0x30] sm:$0xff]  ;;  %137 = vmatprep.mubr.msk.f32.mxu0 %vm143_vm0, %v142_v0  ;;  %v20_v3 = vld [vmem:[%s197_s1 + $0x28] sm:$0xff] }
   0x2   :  { %122 = vmatpush3.msra.mxu0 %v22_v1  ;;  %v19_v4 = vld [vmem:[%s197_s1 + $0x20] sm:$0xff]  ;;  %v18_v5 = vld [vmem:[%s197_s1 + $0x18] sm:$0xff]  ;;  %v17_v6 = vld [vmem:[%s197_s1 + $0x10] sm:$0xff] }
   0x3   :  { %123 = vmatprep.subr.mxu0 %v142_v0  ;;  %v16_v7 = vld [vmem:[%s197_s1 + $0x8] sm:$0xff]  ;;  %v15_v8 = vld [vmem:[%s197_s1] sm:$0xff] }
   0x4   :  { %124 = vmatpush3.msra.mxu0 %v21_v2  ;;  %v14_v9 = vld [vmem:[%s198_s0] sm:$0xff] }
   0x5   :  { %125 = vmatprep.subr.mxu0 %v142_v0  ;;  %v110_v10 = vld [vmem:[%s199_s2] ss:$0 sm:$0xff] }
   0x6   :  { %126 = vmatpush3.msra.mxu0 %v20_v3 }
   0x7   :  { %127 = vmatprep.subr.mxu0 %v142_v0 }
   0x8   :  { %128 = vmatpush3.msra.mxu0 %v19_v4 }
   0x9   :  { %129 = vmatprep.subr.mxu0 %v142_v0 }
   0xa   :  { %130 = vmatpush3.msra.mxu0 %v18_v5 }
   0xb   :  { %131 = vmatprep.subr.mxu0 %v142_v0 }
   0xc   :  { %132 = vmatpush3.msra.mxu0 %v17_v6 }
   0xd   :  { %133 = vmatprep.subr.mxu0 %v142_v0 }
   0xe   :  { %134 = vmatpush3.msra.mxu0 %v16_v7 }
   0xf   :  { %135 = vmatprep.subr.mxu0 %v142_v0 }
  0x10   :  { %136 = vmatpush3.msra.mxu0 %v15_v8 }
  0x11   :  { %138 = vmatmul.mubr.msk.f32.vlgmr.msra.gmra.mxu0 %vm30_vm1, %v14_v9 }
  0xd1   :  { %v100_v11 = vpop.f32.mrf.mxu0 }
  0xd2   :  { %v101_v12 = vadd.f32 %v110_v10, %v100_v11 }
  0xd3   :  { %v139_v13 = vpop.f32.mrf.mxu0 }
  0xd4   :  { %105 = vst.msk [vmem:[%s200_s3] sm:$0xff] %vm104_vm2, %v101_v12 }

</bundles_post_ra>
